<compile_context>
chip_gen: v7x
topology: tpu7x:2x2x1
jax: 0.10.0
libtpu: 0.0.40
codegen_flags: <defaults>
</compile_context>

<pallas_src>
import jax
import jax.numpy as jnp
from jax.experimental import pallas as pl
from jax.experimental.pallas import tpu as pltpu


# ----------------------------------------------------------------------------
# Generation-aware VMEM / tile policy
# ----------------------------------------------------------------------------

def _vmem_policy():
    """Returns (vmem_limit_bytes, per_block_tile_budget_bytes)."""
    cap = None
    try:
        cap = getattr(pltpu.get_tpu_info(), "vmem_capacity_bytes", None)
    except Exception:
        cap = None
    if cap is None:
        cap = 64 * 1024 * 1024                     # conservative (v7x-sized)
    if cap >= 96 * 1024 * 1024:                    # v5e / v6e: 128 MiB VMEM
        return 96 * 1024 * 1024, 8 * 1024 * 1024
    return 48 * 1024 * 1024, 4 * 1024 * 1024       # v7x: 64 MiB VMEM


def _choose_tile(P, C, forced_rows=None):
    """Pick the (8,128)-aligned pixel tiling.

    Returns (r_blk, n_tiles, r_total): rows of 128 lanes per block, number of
    grid tiles along the pixel axis, and the (padded) total row count.
    """
    r_true = -(-P // 128)                          # ceil(P / 128)
    if forced_rows is not None:
        r_blk = int(forced_rows)
        if r_blk <= 0 or r_blk % 8 != 0:
            raise ValueError("tile_rows must be a positive multiple of 8")
    else:
        _, tile_budget = _vmem_policy()
        r_blk = max(8, (tile_budget // (4 * C * 128)) // 8 * 8)
    if r_true <= r_blk:
        # Single block per image: block equals the full (r_true, 128) extent,
        # so the (8,128) divisibility rule does not apply.
        return r_true, 1, r_true
    n_tiles = -(-r_true // r_blk)
    return r_blk, n_tiles, n_tiles * r_blk


# ----------------------------------------------------------------------------
# In-kernel stage math (each operates on one dense (R, 128) channel slab)
# ----------------------------------------------------------------------------

def _k_gamma(x, g):
    # TODO(synk): exact ReconfigISP Gamma parameter mapping is unavailable;
    # y = x ** g with g = sigmoid(param) in (0, 1); x <= 0 maps to 0.
    xc = jnp.maximum(x, 1e-12)
    y = jnp.exp(g * jnp.log(xc))                   # 2 EUP ops / element
    return jnp.where(x <= 0.0, 0.0, y)


def _k_reinhard(x, a, inv_w2):
    # TODO(synk): exact ReconfigISP Reinhard parameter mapping is unavailable;
    # exposure a = 2*p0, white point w = 0.5 + 4*p1 (1/w^2 precomputed host-side).
    y = a * x
    return y * (1.0 + y * inv_w2) * pl.reciprocal(1.0 + y, approx=True)


# ----------------------------------------------------------------------------
# Fused pass kernel builder
# ----------------------------------------------------------------------------

def _build_pass_kernel(ops, C, n_scales, emit_image, emit_csum, true_pixels):
    """ops: list of (stage_name, offset) applied in order to each channel slab."""
    inv_p = 1.0 / float(true_pixels)

    def kernel(*refs):
        idx = 0
        p_ref = refs[idx]; idx += 1                       # SMEM (L,) constants
        s_ref = None
        if n_scales:
            s_ref = refs[idx]; idx += 1                   # SMEM (k, N, C) gw scales
        x_ref = refs[idx]; idx += 1                       # VMEM (1, C, R_blk, 128)
        o_ref = None
        if emit_image:
            o_ref = refs[idx]; idx += 1                   # VMEM (1, C, R_blk, 128)
        csum_ref = None
        if emit_csum:
            csum_ref = refs[idx]; idx += 1                # VMEM (1, 1, C) accumulator

        b = pl.program_id(0)
        t = pl.program_id(1)

        # One dense (R_blk, 128) slab per channel; upcast on load.
        xs = [x_ref[0, c].astype(jnp.float32) for c in range(C)]

        for name, off in ops:
            if name == 'gamma':
                g = p_ref[off]
                xs = [_k_gamma(v, g) for v in xs]
            elif name == 'reinhard':
                a = p_ref[off]
                inv_w2 = p_ref[off + 1]
                xs = [_k_reinhard(v, a, inv_w2) for v in xs]
            elif name == 'wbmanual':
                xs = [xs[c] * p_ref[off + c] for c in range(C)]
            elif name == 'gwscale':
                # Grayworld scale computed by an earlier (read-only) reduce pass.
                xs = [xs[c] * s_ref[off, b, c] for c in range(C)]
            elif name == 'grayworld':
                # Whole image resident in this block (n_tiles == 1); divide by
                # the true pixel count so zero padding is inert.
                means = [jnp.sum(v) * inv_p for v in xs]
                gray = sum(means) * (1.0 / C)
                xs = [xs[c] * (gray / (means[c] + 1e-8)) for c in range(C)]
            elif name == 'skip':
                pass
            else:
                raise NotImplementedError(name)

        if emit_image:
            for c in range(C):
                o_ref[0, c] = xs[c].astype(o_ref.dtype)

        if emit_csum:
            sums = jnp.stack([jnp.sum(v) for v in xs]).reshape(1, 1, C)

            @pl.when(t == 0)
            def _():
                csum_ref[...] = jnp.zeros_like(csum_ref)

            csum_ref[...] += sums

    return kernel


# ----------------------------------------------------------------------------
# Per-pass pallas_call wrapper
# ----------------------------------------------------------------------------

def _run_pass(x_pad, ops, pvec, scales, *, r_blk, n_tiles, true_pixels,
              emit_image, emit_csum, out_dtype):
    N, C, r_total, _ = x_pad.shape
    vmem_limit, _ = _vmem_policy()

    img_spec = pl.BlockSpec((1, C, r_blk, 128), lambda n, t: (n, 0, t, 0))
    smem_spec = pl.BlockSpec(memory_space=pltpu.MemorySpace.SMEM)

    in_specs, args = [smem_spec], [pvec]
    if scales is not None:
        in_specs.append(smem_spec)
        args.append(scales)
    in_specs.append(img_spec)
    args.append(x_pad)

    out_shapes, out_specs = [], []
    if emit_image:
        out_shapes.append(jax.ShapeDtypeStruct((N, C, r_total, 128), out_dtype))
        out_specs.append(img_spec)
    if emit_csum:
        # Block index depends only on the batch axis -> stays VMEM-resident
        # across the tile axis and acts as a per-image accumulator.
        out_shapes.append(jax.ShapeDtypeStruct((N, 1, C), jnp.float32))
        out_specs.append(pl.BlockSpec((1, 1, C), lambda n, t: (n, 0, 0)))

    # TODO(synk): on v7x with N == 1 the "arbitrary" tile axis of the reduce
    # pass serializes the two TensorCores; a lane-packed per-tile csum output
    # would preserve parallelism there.
    dims = ("parallel", "arbitrary" if emit_csum else "parallel")

    kernel = _build_pass_kernel(
        ops, C, 0 if scales is None else int(scales.shape[0]),
        emit_image, emit_csum, true_pixels)

    single = len(out_shapes) == 1
    return pl.pallas_call(
        kernel,
        grid=(N, n_tiles),
        in_specs=in_specs,
        out_specs=out_specs[0] if single else tuple(out_specs),
        out_shape=out_shapes[0] if single else tuple(out_shapes),
        compiler_params=pltpu.CompilerParams(
            dimension_semantics=dims,
            vmem_limit_bytes=vmem_limit),
    )(*args)


# ----------------------------------------------------------------------------
# Parameter packing (sigmoid already applied; fold into kernel-ready constants)
# ----------------------------------------------------------------------------

def _derived_constants(name, p_act):
    if name == 'gamma':
        return [p_act[0]]
    if name == 'reinhard':
        a = 2.0 * p_act[0]
        w = 0.5 + 4.0 * p_act[1]
        return [a, 1.0 / (w * w)]
    if name == 'wbmanual':
        return [5.0 * p_act[0], 5.0 * p_act[1], 5.0 * p_act[2]]
    return []                                       # grayworld / skip


def _pack_ops(stages, *, grayworld_as_scale):
    """stages: list of (name, activated_params).  Returns (ops, const_vec)."""
    ops, consts, off, gw_idx = [], [], 0, 0
    for name, p_act in stages:
        if name == 'grayworld':
            if grayworld_as_scale:
                ops.append(('gwscale', gw_idx))
                gw_idx += 1
            else:
                ops.append(('grayworld', 0))
            continue
        cs = _derived_constants(name, p_act)
        ops.append((name, off))
        consts.extend(cs)
        off += len(cs)
    if consts:
        vec = jnp.stack(consts).astype(jnp.float32)
    else:
        vec = jnp.zeros((1,), jnp.float32)           # never read; avoids 0-size SMEM
    return ops, vec


# ----------------------------------------------------------------------------
# OriginUniversal: architecture parsing + fused forward
# ----------------------------------------------------------------------------

class OriginUniversal:
    """JAX/Pallas port of the PyTorch OriginUniversal ISP pipeline (subset)."""

    # 1-based indices matching the PyTorch pools.
    _POOL_BAYER = {2: 'skip'}
    _POOL_DEMOSAIC = {}
    _POOL_SRGB = {1: 'gamma', 2: 'reinhard', 5: 'grayworld',
                  10: 'skip', 11: 'wbmanual'}
    _PARAM_INIT = {'gamma': [0.0], 'reinhard': [0.0, 0.0], 'grayworld': [],
                   'skip': [], 'wbmanual': [-1.38, -1.38, -1.38]}
    # TODO(synk): remaining pool entries (path_restore proxies, demosaicnet,
    # bm3d proxy net, bilateral/median/fastnlm denoisers, crysis/filmic tone
    # maps, whiteworld, wbquadratic, gtmmanual) need external checkpoints or
    # unpublished sub-module code and are not ported.

    def __init__(self, architecture):
        domain = None
        self.stage_names = []
        self.all_params = []
        self._param_names = []
        step = 0
        for arch_str in architecture.split('_'):
            if arch_str in ('Bayer', 'Demosaic', 'sRGB'):
                domain = arch_str
                continue
            if domain is None:
                raise ValueError(
                    'Domain (Bayer, Demosaic, sRGB) is not specified in ISP '
                    'architecture!')
            step += 1
            pool = {'Bayer': self._POOL_BAYER,
                    'Demosaic': self._POOL_DEMOSAIC,
                    'sRGB': self._POOL_SRGB}[domain]
            idx = int(arch_str)
            if idx not in pool:
                raise NotImplementedError(
                    f'Module index {idx} in domain {domain} is not ported.')
            name = pool[idx]
            self.stage_names.append(name)
            self._param_names.append(f'param_step{step}_{name}')
            self.all_params.append(
                jnp.asarray(self._PARAM_INIT[name], dtype=jnp.float32))
        self.intermediate_results = []

    @property
    def trainable_parameters(self):
        return self.all_params

    def _activated_params(self):
        # PyTorch repeats sigmoid(param) per batch row; rows are identical, so
        # a single vector per stage is equivalent.
        return [jax.nn.sigmoid(p) if p.size else p for p in self.all_params]

    # ----- fused pipeline ---------------------------------------------------

    def _run_pipeline(self, x_pad, stages, r_blk, n_tiles, true_P, out_dtype):
        if n_tiles == 1:
            # Whole (padded) image resident per block: grayworld inline.
            ops, pvec = _pack_ops(stages, grayworld_as_scale=False)
            return _run_pass(x_pad, ops, pvec, None, r_blk=r_blk, n_tiles=1,
                             true_pixels=true_P, emit_image=True,
                             emit_csum=False, out_dtype=out_dtype)

        # Tiled: one read-only reduce pass per grayworld (channel sums only,
        # recomputing the elementwise prefix), then one image-writing pass.
        gw_positions = [i for i, (nm, _) in enumerate(stages) if nm == 'grayworld']
        scales = None
        scale_list = []
        for pos in gw_positions:
            ops, pvec = _pack_ops(stages[:pos], grayworld_as_scale=True)
            csum = _run_pass(x_pad, ops, pvec, scales, r_blk=r_blk,
                             n_tiles=n_tiles, true_pixels=true_P,
                             emit_image=False, emit_csum=True,
                             out_dtype=jnp.float32)
            ch_mean = csum[:, 0, :] / float(true_P)                 # (N, C)
            gray = jnp.mean(ch_mean, axis=-1, keepdims=True)        # (N, 1)
            scale_list.append((gray / (ch_mean + 1e-8)).astype(jnp.float32))
            scales = jnp.stack(scale_list, axis=0)                  # (k, N, C)

        ops, pvec = _pack_ops(stages, grayworld_as_scale=True)
        return _run_pass(x_pad, ops, pvec, scales, r_blk=r_blk, n_tiles=n_tiles,
                         true_pixels=true_P, emit_image=True, emit_csum=False,
                         out_dtype=out_dtype)

    def __call__(self, x, keep_intermediates=False, tile_rows=None):
        """x: (N, C, H, W) -> output tensor of the same shape/dtype."""
        N, C, H, W = x.shape
        P = H * W
        if 'wbmanual' in self.stage_names or 'grayworld' in self.stage_names:
            assert C == 3, "wbmanual / grayworld expect 3-channel input"

        r_blk, n_tiles, r_total = _choose_tile(P, C, tile_rows)
        x_flat = x.reshape(N, C, P)
        pad = r_total * 128 - P
        if pad:
            x_flat = jnp.pad(x_flat, ((0, 0), (0, 0), (0, pad)))
        x_pad = x_flat.reshape(N, C, r_total, 128)   # lane/sublane-dense layout

        stages = list(zip(self.stage_names, self._activated_params()))
        self.intermediate_results = []

        def unpad(y_pad, dtype):
            y = y_pad.reshape(N, C, r_total * 128)[:, :, :P]
            return y.reshape(N, C, H, W).astype(dtype)

        if keep_intermediates:
            # Opt-in PyTorch-compatible behaviour: one (still tiled) pipelined
            # call per stage — never a whole-image VMEM block.
            x_cur = x_pad
            for i, st in enumerate(stages):
                last = i == len(stages) - 1
                x_cur = self._run_pipeline(
                    x_cur, [st], r_blk, n_tiles, P,
                    out_dtype=x.dtype if last else jnp.float32)
                self.intermediate_results.append(unpad(x_cur, x.dtype))
            return unpad(x_cur, x.dtype)

        y_pad = self._run_pipeline(x_pad, stages, r_blk, n_tiles, P,
                                   out_dtype=x.dtype)
        return unpad(y_pad, x.dtype)   # downcast already happened in-kernel

    # ----- pure-JAX reference (for correctness checks) ----------------------

    def reference_forward(self, x):
        act = self._activated_params()
        x = x.astype(jnp.float32)
        for name, p in zip(self.stage_names, act):
            if name == 'gamma':
                xc = jnp.maximum(x, 1e-12)
                x = jnp.where(x <= 0.0, 0.0, xc ** p[0])
            elif name == 'reinhard':
                a = 2.0 * p[0]
                w = 0.5 + 4.0 * p[1]
                y = a * x
                x = y * (1.0 + y / (w * w)) / (1.0 + y)
            elif name == 'wbmanual':
                x = x * (5.0 * p).reshape(1, 3, 1, 1)
            elif name == 'grayworld':
                m = jnp.mean(x, axis=(2, 3), keepdims=True)
                gray = jnp.mean(m, axis=1, keepdims=True)
                x = x * (gray / (m + 1e-8))
            # 'skip': identity
        return x


# ----------------------------------------------------------------------------

if __name__ == "__main__":
    key = jax.random.PRNGKey(0)
    k1, k2 = jax.random.split(key)

    # gamma -> reinhard -> manual WB -> grayworld -> skip
    isp = OriginUniversal("sRGB_01_02_11_05_10")

    # 1) Small image: single fused pass, grayworld inline.
    x = jax.random.uniform(k1, (2, 3, 16, 16), dtype=jnp.float32)
    y = jax.block_until_ready(isp(x))
    assert y.shape == x.shape and y.dtype == x.dtype
    assert bool(jnp.all(jnp.isfinite(y)))
    y_ref = isp.reference_forward(x)
    assert bool(jnp.allclose(y, y_ref, atol=5e-3, rtol=5e-3))

    # 2) Larger, non-128-multiple image: default path vs forced tiling
    #    (exercises zero padding + the read-only reduce-then-scale grayworld).
    x2 = jax.random.uniform(k2, (2, 3, 60, 60), dtype=jnp.float32)
    y2 = jax.block_until_ready(isp(x2))
    y2_ref = isp.reference_forward(x2)
    assert bool(jnp.allclose(y2, y2_ref, atol=5e-3, rtol=5e-3))
    y2_tiled = jax.block_until_ready(isp(x2, tile_rows=8))
    assert bool(jnp.allclose(y2_tiled, y2, atol=1e-3, rtol=1e-3))

    # 3) Opt-in intermediates (per-stage execution, PyTorch-style).
    y_steps = jax.block_until_ready(isp(x, keep_intermediates=True))
    assert len(isp.intermediate_results) == 5
    assert bool(jnp.allclose(y_steps, y, atol=1e-5, rtol=1e-5))

    print("KERNEL_OK")
</pallas_src>

<mosaic_0001>
module attributes {stable_mosaic.version = 11 : i64} {
  func.func @kernel(%arg0: i32, %arg1: i32, %arg2: memref<6xf32, #tpu.memory_space<smem>>, %arg3: memref<1x3x2x128xf32, #tpu.memory_space<vmem>>, %arg4: memref<1x3x2x128xf32, #tpu.memory_space<vmem>>) attributes {dimension_semantics = [#tpu.dimension_semantics<parallel>, #tpu.dimension_semantics<parallel>], iteration_bounds = array<i64: 2, 1>, scalar_prefetch = 0 : i64, scratch_operands = 0 : i64, tpu.core_type = #tpu.core_type<tc>, window_params = [{transform_indices = @transform_0, window_bounds = array<i64: 6>}, {transform_indices = @transform_1, window_bounds = array<i64: 1, 3, 2, 128>}, {transform_indices = @transform_2, window_bounds = array<i64: 1, 3, 2, 128>}]} {
    %c0 = arith.constant 0 : index
    %c0_0 = arith.constant 0 : index
    %c0_1 = arith.constant 0 : index
    %c0_2 = arith.constant 0 : index
    %0 = vector.load %arg3[%c0, %c0_0, %c0_1, %c0_2] : memref<1x3x2x128xf32, #tpu.memory_space<vmem>>, vector<1x1x2x128xf32>
    %1 = vector.shape_cast %0 : vector<1x1x2x128xf32> to vector<2x128xf32>
    %c0_3 = arith.constant 0 : index
    %c1 = arith.constant 1 : index
    %c0_4 = arith.constant 0 : index
    %c0_5 = arith.constant 0 : index
    %2 = vector.load %arg3[%c0_3, %c1, %c0_4, %c0_5] : memref<1x3x2x128xf32, #tpu.memory_space<vmem>>, vector<1x1x2x128xf32>
    %3 = vector.shape_cast %2 : vector<1x1x2x128xf32> to vector<2x128xf32>
    %c0_6 = arith.constant 0 : index
    %c2 = arith.constant 2 : index
    %c0_7 = arith.constant 0 : index
    %c0_8 = arith.constant 0 : index
    %4 = vector.load %arg3[%c0_6, %c2, %c0_7, %c0_8] : memref<1x3x2x128xf32, #tpu.memory_space<vmem>>, vector<1x1x2x128xf32>
    %5 = vector.shape_cast %4 : vector<1x1x2x128xf32> to vector<2x128xf32>
    %c0_9 = arith.constant 0 : index
    %6 = memref.load %arg2[%c0_9] : memref<6xf32, #tpu.memory_space<smem>>
    %cst = arith.constant 9.99999996E-13 : f32
    %7 = vector.broadcast %cst : f32 to vector<2x128xf32>
    %8 = arith.maximumf %1, %7 : vector<2x128xf32>
    %9 = math.log %8 : vector<2x128xf32>
    %10 = vector.broadcast %6 : f32 to vector<2x128xf32>
    %11 = arith.mulf %10, %9 : vector<2x128xf32>
    %12 = math.exp %11 : vector<2x128xf32>
    %cst_10 = arith.constant 0.000000e+00 : f32
    %13 = vector.broadcast %cst_10 : f32 to vector<2x128xf32>
    %14 = arith.cmpf ole, %1, %13 : vector<2x128xf32>
    %cst_11 = arith.constant 0.000000e+00 : f32
    %15 = vector.broadcast %cst_11 : f32 to vector<2x128xf32>
    %16 = arith.select %14, %15, %12 : vector<2x128xi1>, vector<2x128xf32>
    %cst_12 = arith.constant 9.99999996E-13 : f32
    %17 = vector.broadcast %cst_12 : f32 to vector<2x128xf32>
    %18 = arith.maximumf %3, %17 : vector<2x128xf32>
    %19 = math.log %18 : vector<2x128xf32>
    %20 = vector.broadcast %6 : f32 to vector<2x128xf32>
    %21 = arith.mulf %20, %19 : vector<2x128xf32>
    %22 = math.exp %21 : vector<2x128xf32>
    %cst_13 = arith.constant 0.000000e+00 : f32
    %23 = vector.broadcast %cst_13 : f32 to vector<2x128xf32>
    %24 = arith.cmpf ole, %3, %23 : vector<2x128xf32>
    %cst_14 = arith.constant 0.000000e+00 : f32
    %25 = vector.broadcast %cst_14 : f32 to vector<2x128xf32>
    %26 = arith.select %24, %25, %22 : vector<2x128xi1>, vector<2x128xf32>
    %cst_15 = arith.constant 9.99999996E-13 : f32
    %27 = vector.broadcast %cst_15 : f32 to vector<2x128xf32>
    %28 = arith.maximumf %5, %27 : vector<2x128xf32>
    %29 = math.log %28 : vector<2x128xf32>
    %30 = vector.broadcast %6 : f32 to vector<2x128xf32>
    %31 = arith.mulf %30, %29 : vector<2x128xf32>
    %32 = math.exp %31 : vector<2x128xf32>
    %cst_16 = arith.constant 0.000000e+00 : f32
    %33 = vector.broadcast %cst_16 : f32 to vector<2x128xf32>
    %34 = arith.cmpf ole, %5, %33 : vector<2x128xf32>
    %cst_17 = arith.constant 0.000000e+00 : f32
    %35 = vector.broadcast %cst_17 : f32 to vector<2x128xf32>
    %36 = arith.select %34, %35, %32 : vector<2x128xi1>, vector<2x128xf32>
    %c1_18 = arith.constant 1 : index
    %37 = memref.load %arg2[%c1_18] : memref<6xf32, #tpu.memory_space<smem>>
    %c2_19 = arith.constant 2 : index
    %38 = memref.load %arg2[%c2_19] : memref<6xf32, #tpu.memory_space<smem>>
    %39 = vector.broadcast %37 : f32 to vector<2x128xf32>
    %40 = arith.mulf %39, %16 : vector<2x128xf32>
    %41 = vector.broadcast %38 : f32 to vector<2x128xf32>
    %42 = arith.mulf %40, %41 : vector<2x128xf32>
    %cst_20 = arith.constant 1.000000e+00 : f32
    %43 = vector.broadcast %cst_20 : f32 to vector<2x128xf32>
    %44 = arith.addf %43, %42 : vector<2x128xf32>
    %45 = arith.mulf %40, %44 : vector<2x128xf32>
    %cst_21 = arith.constant 1.000000e+00 : f32
    %46 = vector.broadcast %cst_21 : f32 to vector<2x128xf32>
    %47 = arith.addf %46, %40 : vector<2x128xf32>
    %48 = tpu.reciprocal %47 {approx = true} : vector<2x128xf32> -> vector<2x128xf32>
    %49 = arith.mulf %45, %48 : vector<2x128xf32>
    %50 = vector.broadcast %37 : f32 to vector<2x128xf32>
    %51 = arith.mulf %50, %26 : vector<2x128xf32>
    %52 = vector.broadcast %38 : f32 to vector<2x128xf32>
    %53 = arith.mulf %51, %52 : vector<2x128xf32>
    %cst_22 = arith.constant 1.000000e+00 : f32
    %54 = vector.broadcast %cst_22 : f32 to vector<2x128xf32>
    %55 = arith.addf %54, %53 : vector<2x128xf32>
    %56 = arith.mulf %51, %55 : vector<2x128xf32>
    %cst_23 = arith.constant 1.000000e+00 : f32
    %57 = vector.broadcast %cst_23 : f32 to vector<2x128xf32>
    %58 = arith.addf %57, %51 : vector<2x128xf32>
    %59 = tpu.reciprocal %58 {approx = true} : vector<2x128xf32> -> vector<2x128xf32>
    %60 = arith.mulf %56, %59 : vector<2x128xf32>
    %61 = vector.broadcast %37 : f32 to vector<2x128xf32>
    %62 = arith.mulf %61, %36 : vector<2x128xf32>
    %63 = vector.broadcast %38 : f32 to vector<2x128xf32>
    %64 = arith.mulf %62, %63 : vector<2x128xf32>
    %cst_24 = arith.constant 1.000000e+00 : f32
    %65 = vector.broadcast %cst_24 : f32 to vector<2x128xf32>
    %66 = arith.addf %65, %64 : vector<2x128xf32>
    %67 = arith.mulf %62, %66 : vector<2x128xf32>
    %cst_25 = arith.constant 1.000000e+00 : f32
    %68 = vector.broadcast %cst_25 : f32 to vector<2x128xf32>
    %69 = arith.addf %68, %62 : vector<2x128xf32>
    %70 = tpu.reciprocal %69 {approx = true} : vector<2x128xf32> -> vector<2x128xf32>
    %71 = arith.mulf %67, %70 : vector<2x128xf32>
    %c3 = arith.constant 3 : index
    %72 = memref.load %arg2[%c3] : memref<6xf32, #tpu.memory_space<smem>>
    %73 = vector.broadcast %72 : f32 to vector<2x128xf32>
    %74 = arith.mulf %49, %73 : vector<2x128xf32>
    %c4 = arith.constant 4 : index
    %75 = memref.load %arg2[%c4] : memref<6xf32, #tpu.memory_space<smem>>
    %76 = vector.broadcast %75 : f32 to vector<2x128xf32>
    %77 = arith.mulf %60, %76 : vector<2x128xf32>
    %c5 = arith.constant 5 : index
    %78 = memref.load %arg2[%c5] : memref<6xf32, #tpu.memory_space<smem>>
    %79 = vector.broadcast %78 : f32 to vector<2x128xf32>
    %80 = arith.mulf %71, %79 : vector<2x128xf32>
    %81 = vector.shape_cast %74 : vector<2x128xf32> to vector<1x2x128xf32>
    %cst_26 = arith.constant dense<0.000000e+00> : vector<1xf32>
    %82 = vector.multi_reduction <add>, %81, %cst_26 [1, 2] : vector<1x2x128xf32> to vector<1xf32>
    %83 = vector.shape_cast %82 : vector<1xf32> to vector<1x1x1xf32>
    %84 = vector.extract %83[0, 0, 0] : f32 from vector<1x1x1xf32>
    %cst_27 = arith.constant 3.906250e-03 : f32
    %85 = arith.mulf %84, %cst_27 : f32
    %86 = vector.shape_cast %77 : vector<2x128xf32> to vector<1x2x128xf32>
    %cst_28 = arith.constant dense<0.000000e+00> : vector<1xf32>
    %87 = vector.multi_reduction <add>, %86, %cst_28 [1, 2] : vector<1x2x128xf32> to vector<1xf32>
    %88 = vector.shape_cast %87 : vector<1xf32> to vector<1x1x1xf32>
    %89 = vector.extract %88[0, 0, 0] : f32 from vector<1x1x1xf32>
    %cst_29 = arith.constant 3.906250e-03 : f32
    %90 = arith.mulf %89, %cst_29 : f32
    %91 = vector.shape_cast %80 : vector<2x128xf32> to vector<1x2x128xf32>
    %cst_30 = arith.constant dense<0.000000e+00> : vector<1xf32>
    %92 = vector.multi_reduction <add>, %91, %cst_30 [1, 2] : vector<1x2x128xf32> to vector<1xf32>
    %93 = vector.shape_cast %92 : vector<1xf32> to vector<1x1x1xf32>
    %94 = vector.extract %93[0, 0, 0] : f32 from vector<1x1x1xf32>
    %cst_31 = arith.constant 3.906250e-03 : f32
    %95 = arith.mulf %94, %cst_31 : f32
    %cst_32 = arith.constant 0.000000e+00 : f32
    %96 = arith.addf %cst_32, %85 : f32
    %97 = arith.addf %96, %90 : f32
    %98 = arith.addf %97, %95 : f32
    %cst_33 = arith.constant 0.333333343 : f32
    %99 = arith.mulf %98, %cst_33 : f32
    %cst_34 = arith.constant 9.99999993E-9 : f32
    %100 = arith.addf %85, %cst_34 : f32
    %101 = arith.divf %99, %100 : f32
    %102 = vector.broadcast %101 : f32 to vector<2x128xf32>
    %103 = arith.mulf %74, %102 : vector<2x128xf32>
    %cst_35 = arith.constant 9.99999993E-9 : f32
    %104 = arith.addf %90, %cst_35 : f32
    %105 = arith.divf %99, %104 : f32
    %106 = vector.broadcast %105 : f32 to vector<2x128xf32>
    %107 = arith.mulf %77, %106 : vector<2x128xf32>
    %cst_36 = arith.constant 9.99999993E-9 : f32
    %108 = arith.addf %95, %cst_36 : f32
    %109 = arith.divf %99, %108 : f32
    %110 = vector.broadcast %109 : f32 to vector<2x128xf32>
    %111 = arith.mulf %80, %110 : vector<2x128xf32>
    %c0_37 = arith.constant 0 : index
    %c0_38 = arith.constant 0 : index
    %c0_39 = arith.constant 0 : index
    %c0_40 = arith.constant 0 : index
    %112 = vector.load %arg4[%c0_37, %c0_38, %c0_39, %c0_40] : memref<1x3x2x128xf32, #tpu.memory_space<vmem>>, vector<1x1x2x128xf32>
    %113 = vector.shape_cast %112 : vector<1x1x2x128xf32> to vector<2x128xf32>
    %114 = vector.shape_cast %103 : vector<2x128xf32> to vector<1x1x2x128xf32>
    tpu.vector_store %arg4[%c0_37, %c0_38, %c0_39, %c0_40], %114 {strides = array<i32>} : memref<1x3x2x128xf32, #tpu.memory_space<vmem>>, vector<1x1x2x128xf32>,
    %c0_41 = arith.constant 0 : index
    %c1_42 = arith.constant 1 : index
    %c0_43 = arith.constant 0 : index
    %c0_44 = arith.constant 0 : index
    %115 = vector.load %arg4[%c0_41, %c1_42, %c0_43, %c0_44] : memref<1x3x2x128xf32, #tpu.memory_space<vmem>>, vector<1x1x2x128xf32>
    %116 = vector.shape_cast %115 : vector<1x1x2x128xf32> to vector<2x128xf32>
    %117 = vector.shape_cast %107 : vector<2x128xf32> to vector<1x1x2x128xf32>
    tpu.vector_store %arg4[%c0_41, %c1_42, %c0_43, %c0_44], %117 {strides = array<i32>} : memref<1x3x2x128xf32, #tpu.memory_space<vmem>>, vector<1x1x2x128xf32>,
    %c0_45 = arith.constant 0 : index
    %c2_46 = arith.constant 2 : index
    %c0_47 = arith.constant 0 : index
    %c0_48 = arith.constant 0 : index
    %118 = vector.load %arg4[%c0_45, %c2_46, %c0_47, %c0_48] : memref<1x3x2x128xf32, #tpu.memory_space<vmem>>, vector<1x1x2x128xf32>
    %119 = vector.shape_cast %118 : vector<1x1x2x128xf32> to vector<2x128xf32>
    %120 = vector.shape_cast %111 : vector<2x128xf32> to vector<1x1x2x128xf32>
    tpu.vector_store %arg4[%c0_45, %c2_46, %c0_47, %c0_48], %120 {strides = array<i32>} : memref<1x3x2x128xf32, #tpu.memory_space<vmem>>, vector<1x1x2x128xf32>,
    return
  }
  func.func @transform_0(%arg0: i32, %arg1: i32) -> i32 {
    %c0_i32 = arith.constant 0 : i32
    %c0_i32_0 = arith.constant 0 : i32
    return %c0_i32 : i32
  }
  func.func @transform_1(%arg0: i32, %arg1: i32) -> (i32, i32, i32, i32) {
    %c0_i32 = arith.constant 0 : i32
    %c0_i32_0 = arith.constant 0 : i32
    %c0_i32_1 = arith.constant 0 : i32
    return %arg0, %c0_i32, %arg1, %c0_i32_0 : i32, i32, i32, i32
  }
  func.func @transform_2(%arg0: i32, %arg1: i32) -> (i32, i32, i32, i32) {
    %c0_i32 = arith.constant 0 : i32
    %c0_i32_0 = arith.constant 0 : i32
    %c0_i32_1 = arith.constant 0 : i32
    return %arg0, %c0_i32, %arg1, %c0_i32_0 : i32, i32, i32, i32
  }
}

</mosaic_0001>

<bundles_post_ra>
// kernel: tpu_custom_call.1
= control target key start
LH: loop header
LB: loop body
LE: loop exit
PB: predicated region body
PF: predicated region fallthrough
CT: control target
= control target key end

     0   :  { %7 = vsyncpa [#allocation5], 0  ;;  %s935_s0 = inlined_call_operand.hbm [shape: f32[6], index: 0, kind: input, shape index: {}]   ;;  %s936_s1 = inlined_call_operand.hbm [shape: f32[2,3,2,128], index: 1, kind: input, shape index: {}]   ;;  %s937_s2 = inlined_call_operand.hbm [shape: f32[2,3,2,128], index: 2, kind: output, shape index: {}]  }
   0x1   :  { %8 = vsyncpa [#allocation3], 0 }
   0x2   :  { %10 = vsyncpa [#allocation3 + $0x1], 0 }
   0x3   :  { %11 = vsyncpa [#allocation4], 0 }
   0x4   :  { %13 = vsyncpa [#allocation4 + $0x1], 0  ;;  %s722_s9 = smov 0   ;;  %s724_s10 = smov 0  }
   0x5   :  { %s726_s11 = smov 0   ;;  %s728_s12 = smov 0  }
   0x6   :  { %s730_s13 = smov 0   ;;  %s732_s14 = smov 0  }
   0x7 LB: > { %s432_s15 = sadd.s32 4294967295, %s698_s14   ;;  %s433_s16 = sadd.s32 4294967294, %s698_s14   ;;  %s698_s14 = sphi %s732_s14, %s19_s14   ;;  %s694_s13 = sphi %s730_s13, %s957_s13   ;;  %s690_s12 = sphi %s728_s12, %s956_s12   ;;  %s686_s11 = sphi %s726_s11, %s955_s11   ;;  %s682_s10 = sphi %s724_s10, %s954_s10   ;;  %s678_s9 = sphi %s722_s9, %s953_s9  }
   0x8   : > { %s61_s17 = sadd.s32 1, %s686_s11  ;;  %p68_p0 = scmp.ne.s32.totalorder %s686_s11, %s682_s10 }
   0x9   : > { %p69_p1 = scmp.eq.s32.totalorder %s698_s14, 0  ;;  %p74_p2 = scmp.ne.s32.totalorder %s682_s10, %s678_s9 }
   0xa   : > { %p760_p3 = scmp.eq.s32.totalorder %s432_s15, 0  ;;  %p100_p4 = scmp.eq.s32.totalorder %s432_s15, 1 }
   0xb   : > { %p70_p5 = por %p69_p1, %p68_p0  ;;  %p106_p6 = scmp.eq.s32.totalorder %s433_s16, 1 }
   0xc   : > { %s942_s18 = scalar_select %p760_p3, 1, 0 }
   0xd   : > { %p766_p7 = por %p760_p3, %p74_p2  ;;  %p770_p8 = por %p100_p4, %p68_p0 }
   0xe   : > { %p774_p9 = por %p106_p6, %p74_p2  ;;  %p434_p10 = scmp.ge.s32.totalorder %s698_s14, 1 }
   0xf   : > { %s943_s19 = scalar_select %p766_p7, 1, 0 }
  0x10   : > { %s944_s20 = scalar_select %p770_p8, 1, 0 }
  0x11   : > { %s945_s21 = scalar_select %p774_p9, 1, 0 }
  0x12   : > { %p113_p11 = scmp.lt.s32.totalorder %s698_s14, 3  ;;  %p489_p1 = scmp.lt.s32.totalorder %s698_s14, 2 }
  0x13   : > { %s135_s23 = sand.u32 1, %s686_s11   ;;  %s31_s25 = sadd.s32 1, %s694_s13 }
  0x14   : > { %p781_p13 = pnand %p434_p10, %p113_p11  ;;  %p789_p0 = pnand %p489_p1, %p70_p5 }
  0x15   : > { %s452_s26 = smul.u32 6, %s135_s23  ;;  %p33_p4 = scmp.ge.s32.totalorder %s31_s25, 2 }
  0x16   : > { %p476_p7 = pneg %p781_p13  ;;  %s569_s29 = scalar_lea.hbm %s935_s0, 16 }
  0x17   : > { %p570_p6 = scmp.ne.s32.totalorder %s935_s0, %s569_s29  ;;  %p576_p5 = scmp.lt.u32.totalorder %s569_s29, %s935_s0 }
  0x18   : > { %p477_p2 = pnand %p476_p7, %p760_p3 }
  0x1a   : > { %p571_p10 = pneg %p477_p2 }
  0x1c   : > { %p572_p11 = pnand %p571_p10, %p570_p6 }
  0x1e   : > { %p573_p12 = pneg %p572_p11 }
  0x20   : > { %p578_p1 = pnand %p576_p5, %p573_p12 }
  0x22   : > { %581 = shalt.err (!%p578_p1)
}
  0x23   : > { %s700_s6 = smov [#allocation2]   ;;  %s959_s25 = smov (%p33_p4, %s31_s25), 0 }
  0x24   : > { %479 = dma.hbm_to_smem (!%p477_p2), %s935_s0, 16, %s700_s6, [#allocation5]  }
  0x25   : > { %s453_s15 = smul.u32 96, %s694_s13  ;;  %s56_s16 = ssub.s32 %s694_s13, %s959_s25 }
  0x26   : > { %s139_s27 = scalar_lea.vmem [#allocation6], %s452_s26  ;;  %p59_p7 = scmp.eq.s32.totalorder %s56_s16, 0 }
  0x27   : > { %s147_s28 = sshll.u32 %s139_s27, 4  ;;  %s816_s3 = scalar_lea.hbm %s936_s1, %s453_s15  ;;  %s818_s28 = int_to_ptr.vmem [resolvable:$true] %s147_s28 }
  0x28   : > { %s823_s4 = scalar_select %p59_p7, %s686_s11, %s61_s17  }
  0x29   : > { %s825_s5 = scalar_lea.sflag [#allocation3], %s135_s23  ;;  %s582_s6 = scalar_lea.hbm %s816_s3, 96 }
  0x2a   : > { %p583_p12 = scmp.ne.s32.totalorder %s816_s3, %s582_s6  ;;  %p584_p2 = pneg %p789_p0 }
  0x2b   : > { %s587_s8 = scalar_lea.hbm %s936_s1, 192  ;;  %p588_p10 = scmp.lt.u32.totalorder %s816_s3, %s936_s1 }
  0x2c   : > { %p585_p4 = pnand %p584_p2, %p583_p12  ;;  %p589_p11 = scmp.lt.u32.totalorder %s587_s8, %s582_s6 }
  0x2d   : > { %p591_p1 = scmp.lt.u32.totalorder %s582_s6, %s816_s3 }
  0x2e   : > { %p586_p6 = pneg %p585_p4  ;;  %p590_p5 = por %p589_p11, %p588_p10 }
  0x30   : > { %p592_p7 = por %p591_p1, %p590_p5 }
  0x32   : > { %p593_p9 = pnand %p592_p7, %p586_p6 }
  0x34   : > { %596 = shalt.err (!%p593_p9)
}
  0x35   : > { %s597_s17 = scalar_lea.vmem %s818_s28, 96  ;;  %s701_s23 = smov [#allocation6]  }
  0x36   : > { %p598_p12 = scmp.ne.s32.totalorder %s818_s28, %s597_s17  ;;  %s602_s27 = sshll.u32 %s701_s23, 4  ;;  %s603_s27 = int_to_ptr.vmem [resolvable:$false] %s602_s27 }
  0x37   : > { %s604_s29 = scalar_lea.vmem %s603_s27, 192  ;;  %p605_p3 = scmp.lt.s32.totalorder %s818_s28, %s603_s27 }
  0x38   : > { %p600_p4 = pnand %p598_p12, %p584_p2  ;;  %p606_p10 = scmp.lt.s32.totalorder %s604_s29, %s597_s17 }
  0x3a   : > { %p601_p8 = pneg %p600_p4  ;;  %p607_p11 = por %p606_p10, %p605_p3 }
  0x3c   : > { %p608_p5 = pnand %p607_p11, %p601_p8 }
  0x3e   : > { %611 = shalt.err (!%p608_p5)
}
  0x3f   : > { %s702_s30 = smov 32   ;;  %s703_s6 = smov 2  }
  0x40   : > { %483 = dma.hbm_to_vmem [thread:$0]  (!%p789_p0), %s816_s3, 96, %s818_s28, %s825_s5, %s702_s30, %s702_s30, %s703_s6  }
  0x41   : > { %159 = sbr.rel (%p781_p13) target bundleno = 428 (0x1ac), region = 28  ;;  %p948_p9 = scmp.ne.s32.totalorder (!%p781_p13), %s942_s18, 0 }
  0x48   : > { %665 = dma.done.wait (%p948_p9), [#allocation5], 16  }
  0x49   : > { %667 = vsyncadd (%p948_p9), [#allocation5], 4294967280  ;;  %s860_s26 = sand.u32 1, %s682_s10   ;;  %p949_p3 = scmp.ne.s32.totalorder %s943_s19, 0 }
  0x4a   : > { %s454_s7 = smul.u32 6, %s860_s26  ;;  %s166_s8 = scalar_lea.sflag [#allocation3], %s860_s26 }
  0x4c   : > { %s169_s24 = scalar_lea.vmem [#allocation6], %s454_s7 }
  0x4d   : > { %669 = dma.done.wait (%p949_p3), %s166_s8, 96  }
  0x4e   : > { %671 = vsyncadd (%p949_p3), %s166_s8, 4294967200 }
  0x4f   : > { %174 = sfence }
  0x50   : > { %v441_v0 = vld [vmem:[%s169_s24 + $0x4] sm:$0x3]  ;;  %v191_v2 = vld [vmem:[%s169_s24] sm:$0x3]  ;;  %v440_v4 = vld [vmem:[%s169_s24 + $0x2] sm:$0x3] }
  0x51   : > { %v214_v1 = vmax.f32 %v441_v0, 1e-12  ;;  %v197_v3 = vmax.f32 %v191_v2, 1e-12  ;;  %v206_v5 = vmax.f32 %v440_v4, 1e-12 }
  0x52   : > { %s196_s18 = sld [smem:[#allocation2]]  ;;  %s442_s19 = sld [smem:[#allocation2 + $0x1]]  ;;  %vm220_vm0 = vcmp.le.f32.partialorder %v441_v0, 0.0  ;;  %vm204_vm1 = vcmp.le.f32.partialorder %v191_v2, 0.0  ;;  %vm212_vm2 = vcmp.le.f32.partialorder %v440_v4, 0.0  ;;  %vm256_vm3 = vcmask 1041408  }
  0x53   : > { %545 = vlog2.f32 %v214_v1  ;;  %s443_s22 = sld [smem:[#allocation2 + $0x2]]  ;;  %s446_s28 = sld [smem:[#allocation2 + $0x5]] }
  0x54   : > { %547 = vlog2.f32 %v197_v3  ;;  %s444_s3 = sld [smem:[#allocation2 + $0x3]]  ;;  %s445_s5 = sld [smem:[#allocation2 + $0x4]] }
  0x55   : > { %549 = vlog2.f32 %v206_v5  ;;  %p950_p13 = scmp.ne.s32.totalorder %s944_s20, 0 }
  0x58   : > { %v200_v7 = vstv %s196_s18  ;;  %v224_v19 = vstv %s442_s19 }
  0x59   : > { %v226_v23 = vstv %s443_s22  ;;  %v254_v42 = vstv %s446_s28 }
  0x5a   : > { %v248_v46 = vstv %s444_s3  ;;  %v251_v50 = vstv %s445_s5  ;;  %s467_s5 = smul.u32 96, %s690_s12 }
  0x5c   : > { %s885_s12 = scalar_lea.hbm %s937_s2, %s467_s5 }
  0x5d   : > { %v546_v6 = vpop.eup %545 }
  0x5e   : > { %v216_v8 = vmul.f32 0.6931472, %v546_v6  ;;  %v548_v9 = vpop.eup %547 }
  0x5f   : > { %v550_v10 = vpop.eup %549  ;;  %v199_v12 = vmul.f32 0.6931472, %v548_v9 }
  0x60   : > { %v217_v11 = vmul.f32 %v216_v8, %v200_v7  ;;  %v208_v13 = vmul.f32 0.6931472, %v550_v10 }
  0x61   : > { %v201_v15 = vmul.f32 %v200_v7, %v199_v12 }
  0x62   : > { %v218_v14 = vmul.f32 1.442695, %v217_v11  ;;  %v209_v16 = vmul.f32 %v208_v13, %v200_v7 }
  0x63   : > { %v202_v17 = vmul.f32 1.442695, %v201_v15 }
  0x64   : > { %551 = vpow2.f32 %v218_v14  ;;  %v210_v18 = vmul.f32 1.442695, %v209_v16 }
  0x65   : > { %553 = vpow2.f32 %v202_v17 }
  0x66   : > { %555 = vpow2.f32 %v210_v18 }
  0x6e   : > { %v552_v20 = vpop.eup %551 }
  0x6f   : > { %v221_v21 = vsel %vm220_vm0, 0.0, %v552_v20  ;;  %v554_v22 = vpop.eup %553 }
  0x70   : > { %v240_v24 = vmul.f32 %v224_v19, %v221_v21  ;;  %v556_v25 = vpop.eup %555  ;;  %v205_v26 = vsel %vm204_vm1, 0.0, %v554_v22 }
  0x71   : > { %v225_v28 = vmul.f32 %v224_v19, %v205_v26  ;;  %v213_v29 = vsel %vm212_vm2, 0.0, %v556_v25 }
  0x72   : > { %v244_v27 = vadd.f32 1.0, %v240_v24  ;;  %v241_v30 = vmul.f32 %v240_v24, %v226_v23  ;;  %v233_v31 = vmul.f32 %v224_v19, %v213_v29 }
  0x73   : > { %v230_v32 = vadd.f32 1.0, %v225_v28  ;;  %v227_v33 = vmul.f32 %v226_v23, %v225_v28 }
  0x74   : > { %557 = vrcp.f32 %v244_v27  ;;  %v237_v34 = vadd.f32 1.0, %v233_v31  ;;  %v234_v35 = vmul.f32 %v233_v31, %v226_v23  ;;  %v242_v36 = vadd.f32 1.0, %v241_v30 }
  0x75   : > { %559 = vrcp.f32 %v230_v32  ;;  %v228_v37 = vadd.f32 1.0, %v227_v33 }
  0x76   : > { %561 = vrcp.f32 %v237_v34  ;;  %v235_v38 = vadd.f32 1.0, %v234_v35  ;;  %v243_v39 = vmul.f32 %v242_v36, %v240_v24 }
  0x77   : > { %v229_v40 = vmul.f32 %v228_v37, %v225_v28 }
  0x78   : > { %v236_v43 = vmul.f32 %v235_v38, %v233_v31 }
  0x7e   : > { %v558_v41 = vpop.eup %557 }
  0x7f   : > { %v246_v44 = vmul.f32 %v558_v41, %v243_v39  ;;  %v560_v45 = vpop.eup %559 }
  0x80   : > { %v562_v47 = vpop.eup %561  ;;  %v232_v49 = vmul.f32 %v560_v45, %v229_v40 }
  0x81   : > { %v870_v48 = vmul.f32 %v254_v42, %v246_v44  ;;  %v239_v51 = vmul.f32 %v562_v47, %v236_v43 }
  0x82   : > { %v249_v53 = vmul.f32 %v248_v46, %v232_v49 }
  0x83   : > { %v279_v52 = vsel %vm256_vm3, %v870_v48, 0.0  ;;  %v873_v54 = vmul.f32 %v251_v50, %v239_v51 }
  0x84   : > { %280 = vadd.xlane.f32.xlu1 %v279_v52  ;;  %v257_v55 = vsel %vm256_vm3, %v249_v53, 0.0 }
  0x85   : > { %258 = vadd.xlane.f32.xlu0 %v257_v55  ;;  %v268_v56 = vsel %vm256_vm3, %v873_v54, 0.0 }
  0x89   : > { %269 = vadd.xlane.f32.xlu0 %v268_v56 }
 0x111   : > { %v281_v57 = vpop.xlane.xlu1 %280 }
 0x112   : > { %v282_v58 = vrot.slane %v281_v57, 4  ;;  %v259_v59 = vpop.xlane.xlu0 %258 }
 0x113   : > { %v260_v61 = vrot.slane %v259_v59, 4 }
 0x114   : > { %v283_v60 = vadd.f32 %v282_v58, %v281_v57 }
 0x115   : > { %v261_v62 = vadd.f32 %v260_v61, %v259_v59 }
 0x116   : > { %v284_v63 = vrot.slane %v283_v60, 2  ;;  %v270_v0 = vpop.xlane.xlu0 %269 }
 0x117   : > { %v262_v1 = vrot.slane %v261_v62, 2  ;;  %v271_v2 = vrot.slane %v270_v0, 4 }
 0x118   : > { %v285_v5 = vadd.f32 %v284_v63, %v283_v60 }
 0x119   : > { %v272_v3 = vadd.f32 %v271_v2, %v270_v0  ;;  %v263_v4 = vadd.f32 %v262_v1, %v261_v62 }
 0x11a   : > { %v286_v10 = vrot.slane %v285_v5, 1 }
 0x11b   : > { %v273_v6 = vrot.slane %v272_v3, 2  ;;  %v264_v7 = vrot.slane %v263_v4, 1 }
 0x11c   : > { %v287_v13 = vadd.f32 %v286_v10, %v285_v5 }
 0x11d   : > { %v274_v8 = vadd.f32 %v273_v6, %v272_v3  ;;  %v265_v9 = vadd.f32 %v264_v7, %v263_v4 }
 0x11f   : > { %455 = vpush %v265_v9  ;;  %v275_v11 = vrot.slane %v274_v8, 1 }
 0x121   : > { %v276_v12 = vadd.f32 %v275_v11, %v274_v8 }
 0x123   : > { %457 = vpush %v276_v12 }
 0x124   : > { %459 = vpush %v287_v13 }
 0x150   : > { %s456_s15 = spop %455 }
 0x151   : > { %s267_s16 = smul.f32 0.00390625, %s456_s15  ;;  %s190_s15 = scalar_lea.vmem [#allocation7], %s454_s7 }
 0x152   : > { %s321_s7 = scalar_lea.sflag [#allocation4], %s860_s26 }
 0x153   : > { %s294_s17 = sadd.f32 1e-08, %s267_s16 }
 0x154   : > { %s458_s23 = spop %457 }
 0x155   : > { %v295_v14 = vstv %s294_s17  ;;  %s278_s27 = smul.f32 0.00390625, %s458_s23  ;;  %s460_s29 = spop %459 }
 0x156   : > { %563 = vrcp.f32 %v295_v14  ;;  %s289_s30 = smul.f32 0.00390625, %s460_s29  ;;  %s335_s17 = sshll.u32 %s190_s15, 4  ;;  %s879_s17 = int_to_ptr.vmem [resolvable:$true] %s335_s17 }
 0x157   : > { %s301_s6 = sadd.f32 1e-08, %s278_s27 }
 0x158   : > { %s308_s8 = sadd.f32 1e-08, %s289_s30 }
 0x159   : > { %v302_v15 = vstv %s301_s6  ;;  %s291_s24 = sadd.f32 %s278_s27, %s267_s16 }
 0x15a   : > { %565 = vrcp.f32 %v302_v15  ;;  %v309_v16 = vstv %s308_s8  ;;  %s704_s8 = smov [#allocation7]  }
 0x15b   : > { %567 = vrcp.f32 %v309_v16  ;;  %s292_s18 = sadd.f32 %s291_s24, %s289_s30  ;;  %s612_s30 = scalar_lea.vmem %s879_s17, 96 }
 0x15c   : > { %p613_p8 = scmp.ne.s32.totalorder %s879_s17, %s612_s30  ;;  %s616_s24 = sshll.u32 %s704_s8, 4  ;;  %s617_s24 = int_to_ptr.vmem [resolvable:$false] %s616_s24 }
 0x15d   : > { %s293_s19 = smul.f32 0.33333334, %s292_s18  ;;  %s618_s18 = scalar_lea.vmem %s617_s24, 192 }
 0x15e   : > { %p614_p0 = pnand %p613_p8, %p950_p13  ;;  %p619_p6 = scmp.lt.s32.totalorder %s879_s17, %s617_s24 }
 0x15f   : > { %p620_p1 = scmp.lt.s32.totalorder %s618_s18, %s612_s30 }
 0x160   : > { %v564_v17 = vpop.eup %563  ;;  %p615_p2 = pneg %p614_p0 }
 0x161   : > { %461 = vpush %v564_v17  ;;  %p621_p7 = por %p620_p1, %p619_p6 }
 0x163   : > { %p622_p12 = pnand %p621_p7, %p615_p2 }
 0x164   : > { %v566_v18 = vpop.eup %565 }
 0x165   : > { %463 = vpush %v566_v18  ;;  %v568_v19 = vpop.eup %567 }
 0x166   : > { %465 = vpush %v568_v19 }
 0x192   : > { %s462_s22 = spop %461 }
 0x193   : > { %s298_s28 = smul.f32 %s462_s22, %s293_s19 }
 0x195   : > { %v299_v20 = vstv %s298_s28 }
 0x196   : > { %v300_v21 = vmul.f32 %v299_v20, %v249_v53  ;;  %s464_s3 = spop %463 }
 0x197   : > { %s305_s23 = smul.f32 %s464_s3, %s293_s19  ;;  %s466_s29 = spop %465 }
 0x198   : > { %315 = vst [vmem:[%s190_s15] sm:$0x3] %v300_v21  ;;  %s312_s6 = smul.f32 %s466_s29, %s293_s19 }
 0x199   : > { %v306_v22 = vstv %s305_s23 }
 0x19a   : > { %v307_v23 = vmul.f32 %v306_v22, %v873_v54  ;;  %v313_v24 = vstv %s312_s6 }
 0x19b   : > { %v314_v25 = vmul.f32 %v313_v24, %v870_v48 }
 0x19c   : > { %447 = vst [vmem:[%s190_s15 + $0x2] sm:$0x3] %v307_v23 }
 0x19d   : > { %448 = vst [vmem:[%s190_s15 + $0x4] sm:$0x3] %v314_v25 }
 0x19e   : > { %625 = shalt.err (!%p622_p12)
}
 0x19f   : > { %s626_s19 = scalar_lea.hbm %s885_s12, 96  ;;  %s630_s3 = scalar_lea.hbm %s937_s2, 192 }
 0x1a0   : > { %p627_p4 = scmp.ne.s32.totalorder %s885_s12, %s626_s19  ;;  %p631_p5 = scmp.lt.u32.totalorder %s885_s12, %s937_s2 }
 0x1a1   : > { %p632_p9 = scmp.lt.u32.totalorder %s630_s3, %s626_s19  ;;  %p634_p8 = scmp.lt.u32.totalorder %s626_s19, %s885_s12 }
 0x1a2   : > { %p628_p10 = pnand %p627_p4, %p950_p13 }
 0x1a3   : > { %p633_p3 = por %p632_p9, %p631_p5 }
 0x1a4   : > { %p629_p11 = pneg %p628_p10 }
 0x1a5   : > { %p635_p0 = por %p634_p8, %p633_p3 }
 0x1a7   : > { %p636_p2 = pnand %p635_p0, %p629_p11 }
 0x1a9   : > { %639 = shalt.err (!%p636_p2)
}
 0x1aa   : > { %s705_s23 = smov 32   ;;  %s706_s29 = smov 2  }
 0x1ab   : > { %474 = dma.vmem_to_hbm [thread:$0]  (%p950_p13), %s879_s17, 96, %s885_s12, %s321_s7, %s705_s23, %s705_s23, %s706_s29  }
 0x1ac PF: > { %s350_s6 = sand.u32 1, %s678_s9   ;;  %p951_p6 = scmp.ne.s32.totalorder %s945_s21, 0 }
 0x1ad   : > { %p952_p1 = scmp.ge.s32.totalorder %s698_s14, 2  ;;  %s351_s16 = scalar_lea.sflag [#allocation4], %s350_s6 }
 0x1af   : > { %p485_p7 = pnand %p952_p1, %p951_p6 }
 0x1b1   : > { %673 = dma.done.wait (!%p485_p7), %s351_s16, 96  }
 0x1b2   : > { %675 = vsyncadd (!%p485_p7), %s351_s16, 4294967200  ;;  %s19_s14 = sadd.s32 1, %s698_s14   ;;  %s953_s9 = smov %s682_s10 }
 0x1b3   : > { %p16_p12 = scmp.ge.s32.totalorder %s19_s14, 4   ;;  %s954_s10 = smov %s686_s11 }
 0x1b4   : > { %s955_s11 = smov %s823_s4  ;;  %s956_s12 = smov %s694_s13 }
 0x1b5   : > { %s957_s13 = smov %s959_s25  ;;  %18 = sbr.rel (!%p16_p12) target bundleno = 7 (0x7), region = 82 }
 0x1bc   :  { %356 = vsyncpa [#allocation3], 1 }
 0x1bd   :  { %358 = vsyncpa [#allocation3 + $0x1], 1 }
 0x1be   :  { %359 = vsyncpa [#allocation4], 1 }
 0x1bf   :  { %361 = vsyncpa [#allocation4 + $0x1], 1 }
 0x1c0   :  { %362 = vsyncpa [#allocation5], 1 }
 0x1c1   :  { %364 = vsyncpa [#allocation5 + $0x1], 1 }

</bundles_post_ra>
